<compile_context>
chip_gen: v7x
topology: tpu7x:2x2x1
jax: 0.10.0
libtpu: 0.0.40
codegen_flags: <defaults>
</compile_context>

<pallas_src>
import functools

import jax
import jax.numpy as jnp
from jax import lax
from jax.experimental import pallas as pl
from jax.experimental.pallas import tpu as pltpu


def _cdiv(a, b):
    return -(-a // b)


def _round_up(x, m):
    return ((x + m - 1) // m) * m


def _pow(x, gamma):
    """x**gamma: plain VPU multiplies for integral gamma, exp(g*log x) else."""
    if float(gamma) == int(gamma):
        return lax.integer_pow(x, int(gamma))
    return jnp.exp(jnp.float32(gamma) * jnp.log(x))


def _focal_kernel(pred_ref, tgt_ref, pos_ref, neg_ref, *,
                  gamma, smooth, tail, mask_cols):
    m = pl.program_id(1)
    nm = pl.num_programs(1)

    # Output blocks are resident across the (arbitrary) spatial axis:
    # use them directly as the (TR, 1) accumulators.
    @pl.when(m == 0)
    def _():
        pos_ref[...] = jnp.zeros_like(pos_ref)
        neg_ref[...] = jnp.zeros_like(neg_ref)

    p = pred_ref[...].astype(jnp.float32)     # (TR, TM)
    t = tgt_ref[...].astype(jnp.float32)      # (TR, TM)
    if smooth:  # matches PyTorch truthiness: smooth=0.0 / None is a no-op
        t = jnp.clip(t, jnp.float32(smooth), jnp.float32(1.0 - smooth))

    one_m_p = 1.0 - p
    term_pos = t * _pow(one_m_p, gamma) * jnp.log(p)
    term_neg = (1.0 - t) * _pow(p, gamma) * jnp.log(one_m_p)

    def _accumulate(tp, tn):
        # Lane reduce per tile (XLU slot); only (TR, 1) is carried across m.
        pos_ref[...] += jnp.sum(tp, axis=1, keepdims=True)
        neg_ref[...] += jnp.sum(tn, axis=1, keepdims=True)

    if mask_cols:
        # Mask (iota + compare + select) only runs on the tail tile.
        @pl.when(m == nm - 1)
        def _():
            cols = lax.broadcasted_iota(jnp.int32, term_pos.shape, 1)
            valid = cols < tail
            _accumulate(jnp.where(valid, term_pos, 0.0),
                        jnp.where(valid, term_neg, 0.0))

        @pl.when(m != nm - 1)
        def _():
            _accumulate(term_pos, term_neg)
    else:
        _accumulate(term_pos, term_neg)


def multi_focal_loss(pred, target, alpha, class_weight, *, gamma=2.0,
                     smooth=None, size_average=True,
                     tile_target_bytes=2 * 1024 * 1024):
    """JAX/Pallas equivalent of MultiFocalLoss.forward.

    pred, target: (N, C, H, W) or (N, C, M) probability tensors (f32 or bf16).
    alpha, class_weight: per-class factors reshapeable to (C,).
    Returns a scalar float32.
    """
    if pred.ndim > 2:
        pred = pred.reshape(pred.shape[0], pred.shape[1], -1)
    if target.ndim == 4:
        target = target.reshape(target.shape[0], target.shape[1], -1)
    elif pred.shape != target.shape:
        raise ValueError("pred.size should be same as target.size")

    N, C, M = pred.shape
    R = N * C
    total_elems = N * C * M

    # Lane-dense layout: channel folded into rows, spatial on lanes.
    pred2 = pred.reshape(R, M)
    tgt2 = target.reshape(R, M)

    a = alpha.astype(jnp.float32).reshape(-1)            # (C,)
    w = class_weight.astype(jnp.float32).reshape(-1)     # (C,)
    coef_pos = jnp.tile(w * a, N)                         # (R,) = weight*alpha
    coef_neg = jnp.tile(w * (1.0 - a), N)                 # (R,) = weight*(1-alpha)

    # ---- Fold spatial into rows while R is small: bigger per-step tiles and
    # >= 2 row tiles for v7x megacore on large spatial extents. ---------------
    fold = 1
    while (fold < 128 and R * fold * 2 <= 256 and M % (fold * 2) == 0
           and M // (fold * 2) >= 512):
        fold *= 2
    Rf, Mf = R * fold, M // fold
    if fold > 1:
        pred2 = pred2.reshape(Rf, Mf)
        tgt2 = tgt2.reshape(Rf, Mf)
        coef_pos = jnp.repeat(coef_pos, fold)
        coef_neg = jnp.repeat(coef_neg, fold)

    # ---- Row tiling. Pad rows (p = 0.5 -> finite terms) instead of in-kernel
    # row masking; padded rows are dropped in the final reduction below. ------
    row_granule = 8 if pred2.dtype.itemsize >= 4 else 16
    TR_cap = 128
    if Rf <= TR_cap:
        nr = 1
        TR = _round_up(Rf, row_granule)
    else:
        nr = _cdiv(Rf, TR_cap)
        TR = _round_up(_cdiv(Rf, nr), row_granule)
    R_pad = nr * TR
    if R_pad != Rf:
        pad = R_pad - Rf
        pred2 = jnp.concatenate(
            [pred2, jnp.full((pad, Mf), 0.5, pred2.dtype)], axis=0)
        tgt2 = jnp.concatenate(
            [tgt2, jnp.full((pad, Mf), 0.5, tgt2.dtype)], axis=0)

    # ---- Column tiling: ~tile_target_bytes of f32 per input tile. -----------
    tm_target = max(128, (tile_target_bytes // (TR * 4)) // 128 * 128)
    if Mf <= tm_target:
        TM, nm, tail = Mf, 1, Mf          # full extent (no masking needed)
        mask_cols = False
    else:
        TM = tm_target                    # multiple of 128
        nm = _cdiv(Mf, TM)
        tail = Mf - (nm - 1) * TM
        mask_cols = tail != TM

    kernel = functools.partial(_focal_kernel, gamma=float(gamma),
                               smooth=smooth, tail=tail, mask_cols=mask_cols)

    sum_pos, sum_neg = pl.pallas_call(
        kernel,
        out_shape=(jax.ShapeDtypeStruct((R_pad, 1), jnp.float32),
                   jax.ShapeDtypeStruct((R_pad, 1), jnp.float32)),
        grid_spec=pltpu.PrefetchScalarGridSpec(
            num_scalar_prefetch=0,
            grid=(nr, nm),
            in_specs=[
                pl.BlockSpec((TR, TM), lambda r, m: (r, m)),   # pred
                pl.BlockSpec((TR, TM), lambda r, m: (r, m)),   # target
            ],
            out_specs=(
                pl.BlockSpec((TR, 1), lambda r, m: (r, 0)),    # sum_pos
                pl.BlockSpec((TR, 1), lambda r, m: (r, 0)),    # sum_neg
            ),
        ),
        compiler_params=pltpu.CompilerParams(
            dimension_semantics=("parallel", "arbitrary"),
            vmem_limit_bytes=32 * 1024 * 1024),
    )(pred2, tgt2)

    # Tiny weighted reduction over real rows; pad rows are simply dropped.
    total = -jnp.sum(coef_pos * sum_pos[:Rf, 0] + coef_neg * sum_neg[:Rf, 0])
    if size_average:
        total = total / jnp.float32(total_elems)
    return total


def _reference(pred, target, alpha, class_weight, gamma=2.0, smooth=None,
               size_average=True):
    """Pure-JAX reference mirroring the PyTorch forward exactly."""
    if smooth:
        target = jnp.clip(target, smooth, 1.0 - smooth)
    if pred.ndim > 2:
        pred = pred.reshape(pred.shape[0], pred.shape[1], -1)
    if target.ndim == 4:
        target = target.reshape(target.shape[0], target.shape[1], -1)
    p = pred.astype(jnp.float32)
    t = target.astype(jnp.float32)
    a = alpha.astype(jnp.float32).reshape(1, -1, 1)
    w = class_weight.astype(jnp.float32).reshape(1, -1, 1)
    loss = (-a * t * (1.0 - p) ** gamma * jnp.log(p)
            - (1.0 - a) * (1.0 - t) * p ** gamma * jnp.log(1.0 - p))
    loss = w * loss
    return jnp.mean(loss) if size_average else jnp.sum(loss)


def _check(name, pred, target, alpha, cw, tile_target_bytes=None, **kw):
    kernel_kw = dict(kw)
    if tile_target_bytes is not None:
        kernel_kw["tile_target_bytes"] = tile_target_bytes
    out = multi_focal_loss(pred, target, alpha, cw, **kernel_kw)
    jax.block_until_ready(out)
    ref = _reference(pred, target, alpha, cw, **kw)
    assert jnp.allclose(out, ref, rtol=1e-5, atol=1e-5), (
        name, float(out), float(ref))


if __name__ == "__main__":
    key = jax.random.PRNGKey(0)
    ks = jax.random.split(key, 12)

    # ---- Test 1: canonical small NCHW shape, gamma=2, no smoothing ---------
    N, C, H, W = 2, 4, 16, 16
    pred = jax.nn.sigmoid(jax.random.normal(ks[0], (N, C, H, W), jnp.float32))
    target = jax.random.uniform(ks[1], (N, C, H, W), jnp.float32, 0.05, 0.95)
    ones = jnp.ones((C, 1), jnp.float32)
    _check("t1", pred, target, ones, ones, gamma=2.0, smooth=None,
           size_average=True)

    # ---- Test 2: 3D input, non-trivial alpha / class_weight, smoothing -----
    pred2 = jax.nn.sigmoid(jax.random.normal(ks[2], (2, 4, 600), jnp.float32))
    target2 = jax.random.uniform(ks[3], (2, 4, 600), jnp.float32)
    alpha2 = jnp.array([[0.1], [0.2], [0.3], [0.4]], jnp.float32)
    cw2 = jnp.array([[1.0], [2.0], [0.5], [1.5]], jnp.float32)
    _check("t2", pred2, target2, alpha2, cw2, gamma=2.0, smooth=0.1,
           size_average=True)

    # ---- Test 3: larger spatial extent -> exercises the spatial->row fold;
    #              non-integer gamma; sum (not mean) reduction --------------
    pred3 = jax.nn.sigmoid(jax.random.normal(ks[4], (2, 4, 64, 96), jnp.float32))
    target3 = jax.random.uniform(ks[5], (2, 4, 64, 96), jnp.float32)
    _check("t3", pred3, target3, alpha2, cw2, gamma=1.5, smooth=None,
           size_average=False)

    # ---- Test 4: forced small tiles -> multi-tile spatial grid with a
    #              pl.when-gated masked tail tile ---------------------------
    pred4 = jax.nn.sigmoid(jax.random.normal(ks[6], (2, 4, 2600), jnp.float32))
    target4 = jax.random.uniform(ks[7], (2, 4, 2600), jnp.float32)
    _check("t4", pred4, target4, alpha2, cw2, gamma=2.0, smooth=None,
           size_average=True, tile_target_bytes=64 * 1024)

    # ---- Test 5: many channels -> multiple row tiles + row padding ---------
    C5 = 100
    pred5 = jax.nn.sigmoid(jax.random.normal(ks[8], (3, C5, 160), jnp.float32))
    target5 = jax.random.uniform(ks[9], (3, C5, 160), jnp.float32)
    alpha5 = jax.random.uniform(ks[10], (C5, 1), jnp.float32, 0.1, 0.9)
    cw5 = jax.random.uniform(ks[11], (C5, 1), jnp.float32, 0.5, 2.0)
    _check("t5", pred5, target5, alpha5, cw5, gamma=2.0, smooth=0.05,
           size_average=True)

    print("KERNEL_OK")
</pallas_src>

<mosaic_0001>
module attributes {stable_mosaic.version = 11 : i64} {
  func.func @_focal_kernel(%arg0: i32, %arg1: i32, %arg2: memref<8x256xf32, #tpu.memory_space<vmem>>, %arg3: memref<8x256xf32, #tpu.memory_space<vmem>>, %arg4: memref<8x1xf32, #tpu.memory_space<vmem>>, %arg5: memref<8x1xf32, #tpu.memory_space<vmem>>) attributes {dimension_semantics = [#tpu.dimension_semantics<parallel>, #tpu.dimension_semantics<arbitrary>], iteration_bounds = array<i64: 1, 1>, scalar_prefetch = 0 : i64, scratch_operands = 0 : i64, tpu.core_type = #tpu.core_type<tc>, window_params = [{transform_indices = @transform_0, window_bounds = array<i64: 8, 256>}, {transform_indices = @transform_1, window_bounds = array<i64: 8, 256>}, {transform_indices = @transform_2, window_bounds = array<i64: 8, 1>}, {transform_indices = @transform_3, window_bounds = array<i64: 8, 1>}]} {
    %c0_i32 = arith.constant 0 : i32
    %0 = arith.cmpi eq, %arg1, %c0_i32 : i32
    %1 = arith.extui %0 : i1 to i32
    %c0_i32_0 = arith.constant 0 : i32
    %2 = arith.cmpi ne, %1, %c0_i32_0 : i32
    scf.if %2 {
      %cst_15 = arith.constant 0.000000e+00 : f32
      %27 = vector.broadcast %cst_15 : f32 to vector<8x1xf32>
      %c0_16 = arith.constant 0 : index
      %c0_17 = arith.constant 0 : index
      %28 = vector.load %arg4[%c0_16, %c0_17] : memref<8x1xf32, #tpu.memory_space<vmem>>, vector<8x1xf32>
      tpu.vector_store %arg4[%c0_16, %c0_17], %27 {strides = array<i32>} : memref<8x1xf32, #tpu.memory_space<vmem>>, vector<8x1xf32>,
      %cst_18 = arith.constant 0.000000e+00 : f32
      %29 = vector.broadcast %cst_18 : f32 to vector<8x1xf32>
      %c0_19 = arith.constant 0 : index
      %c0_20 = arith.constant 0 : index
      %30 = vector.load %arg5[%c0_19, %c0_20] : memref<8x1xf32, #tpu.memory_space<vmem>>, vector<8x1xf32>
      tpu.vector_store %arg5[%c0_19, %c0_20], %29 {strides = array<i32>} : memref<8x1xf32, #tpu.memory_space<vmem>>, vector<8x1xf32>,
    } else {
    }
    %c0 = arith.constant 0 : index
    %c0_1 = arith.constant 0 : index
    %3 = vector.load %arg2[%c0, %c0_1] : memref<8x256xf32, #tpu.memory_space<vmem>>, vector<8x256xf32>
    %c0_2 = arith.constant 0 : index
    %c0_3 = arith.constant 0 : index
    %4 = vector.load %arg3[%c0_2, %c0_3] : memref<8x256xf32, #tpu.memory_space<vmem>>, vector<8x256xf32>
    %cst = arith.constant 1.000000e+00 : f32
    %5 = vector.broadcast %cst : f32 to vector<8x256xf32>
    %6 = arith.subf %5, %3 : vector<8x256xf32>
    %7 = arith.mulf %6, %6 : vector<8x256xf32>
    %8 = arith.mulf %4, %7 : vector<8x256xf32>
    %9 = math.log %3 : vector<8x256xf32>
    %10 = arith.mulf %8, %9 : vector<8x256xf32>
    %cst_4 = arith.constant 1.000000e+00 : f32
    %11 = vector.broadcast %cst_4 : f32 to vector<8x256xf32>
    %12 = arith.subf %11, %4 : vector<8x256xf32>
    %13 = arith.mulf %3, %3 : vector<8x256xf32>
    %14 = arith.mulf %12, %13 : vector<8x256xf32>
    %15 = math.log %6 : vector<8x256xf32>
    %16 = arith.mulf %14, %15 : vector<8x256xf32>
    %c0_5 = arith.constant 0 : index
    %c0_6 = arith.constant 0 : index
    %17 = vector.load %arg4[%c0_5, %c0_6] : memref<8x1xf32, #tpu.memory_space<vmem>>, vector<8x1xf32>
    %cst_7 = arith.constant dense<0.000000e+00> : vector<8xf32>
    %18 = vector.multi_reduction <add>, %10, %cst_7 [1] : vector<8x256xf32> to vector<8xf32>
    %19 = vector.shape_cast %18 : vector<8xf32> to vector<8x1xf32>
    %20 = arith.addf %17, %19 : vector<8x1xf32>
    %c0_8 = arith.constant 0 : index
    %c0_9 = arith.constant 0 : index
    %21 = vector.load %arg4[%c0_8, %c0_9] : memref<8x1xf32, #tpu.memory_space<vmem>>, vector<8x1xf32>
    tpu.vector_store %arg4[%c0_8, %c0_9], %20 {strides = array<i32>} : memref<8x1xf32, #tpu.memory_space<vmem>>, vector<8x1xf32>,
    %c0_10 = arith.constant 0 : index
    %c0_11 = arith.constant 0 : index
    %22 = vector.load %arg5[%c0_10, %c0_11] : memref<8x1xf32, #tpu.memory_space<vmem>>, vector<8x1xf32>
    %cst_12 = arith.constant dense<0.000000e+00> : vector<8xf32>
    %23 = vector.multi_reduction <add>, %16, %cst_12 [1] : vector<8x256xf32> to vector<8xf32>
    %24 = vector.shape_cast %23 : vector<8xf32> to vector<8x1xf32>
    %25 = arith.addf %22, %24 : vector<8x1xf32>
    %c0_13 = arith.constant 0 : index
    %c0_14 = arith.constant 0 : index
    %26 = vector.load %arg5[%c0_13, %c0_14] : memref<8x1xf32, #tpu.memory_space<vmem>>, vector<8x1xf32>
    tpu.vector_store %arg5[%c0_13, %c0_14], %25 {strides = array<i32>} : memref<8x1xf32, #tpu.memory_space<vmem>>, vector<8x1xf32>,
    return
  }
  func.func @transform_0(%arg0: i32, %arg1: i32) -> (i32, i32) {
    %c0_i32 = arith.constant 0 : i32
    return %arg0, %arg1 : i32, i32
  }
  func.func @transform_1(%arg0: i32, %arg1: i32) -> (i32, i32) {
    %c0_i32 = arith.constant 0 : i32
    return %arg0, %arg1 : i32, i32
  }
  func.func @transform_2(%arg0: i32, %arg1: i32) -> (i32, i32) {
    %c0_i32 = arith.constant 0 : i32
    %c0_i32_0 = arith.constant 0 : i32
    return %arg0, %c0_i32 : i32, i32
  }
  func.func @transform_3(%arg0: i32, %arg1: i32) -> (i32, i32) {
    %c0_i32 = arith.constant 0 : i32
    %c0_i32_0 = arith.constant 0 : i32
    return %arg0, %c0_i32 : i32, i32
  }
}

</mosaic_0001>

<bundles_post_ra>
// kernel: tpu_custom_call.1
= control target key start
LH: loop header
LB: loop body
LE: loop exit
PB: predicated region body
PF: predicated region fallthrough
CT: control target
= control target key end

     0   :  { %9 = vsyncpa [#allocation3], 0  ;;  %s223_s0 = inlined_call_operand.hbm [shape: f32[8,256], index: 0, kind: input, shape index: {}]   ;;  %s224_s1 = inlined_call_operand.hbm [shape: f32[8,256], index: 1, kind: input, shape index: {}]   ;;  %s225_s2 = inlined_call_operand.vmem [shape: f32[8,1], index: 2, kind: output, shape index: {0}]   ;;  %s226_s3 = inlined_call_operand.vmem [shape: f32[8,1], index: 3, kind: output, shape index: {1}]  }
   0x1   :  { %10 = vsyncpa [#allocation5], 0  ;;  %s154_s12 = smov [#allocation2]   ;;  %s155_s14 = smov [#allocation4]  }
   0x2   :  { %s17_s13 = sshll.u32 %s154_s12, 4  ;;  %s27_s15 = sshll.u32 %s155_s14, 4  ;;  %s18_s13 = int_to_ptr.vmem [resolvable:$true] %s17_s13  ;;  %s28_s15 = int_to_ptr.vmem [resolvable:$true] %s27_s15 }
   0x3   :  { %s106_s18 = scalar_lea.hbm %s223_s0, 256 }
   0x4   :  { %p107_p0 = scmp.ne.s32.totalorder %s223_s0, %s106_s18  ;;  %p110_p1 = scmp.lt.u32.totalorder %s106_s18, %s223_s0 }
   0x6   :  { %p112_p2 = pnand %p110_p1, %p107_p0 }
   0x8   :  { %115 = shalt.err (!%p112_p2)
}
   0x9   :  { %s116_s23 = scalar_lea.vmem %s18_s13, 256  ;;  %p121_p4 = scmp.lt.s32.totalorder %s18_s13, %s18_s13 }
   0xa   :  { %p117_p3 = scmp.ne.s32.totalorder %s18_s13, %s116_s23  ;;  %p122_p5 = scmp.lt.s32.totalorder %s116_s23, %s116_s23 }
   0xc   :  { %p123_p6 = por %p122_p5, %p121_p4 }
   0xe   :  { %p124_p7 = pnand %p123_p6, %p117_p3 }
  0x10   :  { %127 = shalt.err (!%p124_p7)
}
  0x11   :  { %20 = dma.hbm_to_vmem [thread:$0]  %s223_s0, 256, %s18_s13, [#allocation3]  }
  0x12   :  { %s128_s28 = scalar_lea.hbm %s224_s1, 256 }
  0x13   :  { %p129_p8 = scmp.ne.s32.totalorder %s224_s1, %s128_s28  ;;  %p132_p9 = scmp.lt.u32.totalorder %s128_s28, %s224_s1 }
  0x15   :  { %p134_p10 = pnand %p132_p9, %p129_p8 }
  0x17   :  { %137 = shalt.err (!%p134_p10)
}
  0x18   :  { %s138_s6 = scalar_lea.vmem %s28_s15, 256  ;;  %p143_p12 = scmp.lt.s32.totalorder %s28_s15, %s28_s15 }
  0x19   :  { %p139_p11 = scmp.ne.s32.totalorder %s28_s15, %s138_s6  ;;  %p144_p13 = scmp.lt.s32.totalorder %s138_s6, %s138_s6 }
  0x1b   :  { %p145_p0 = por %p144_p13, %p143_p12 }
  0x1d   :  { %p146_p1 = pnand %p145_p0, %p139_p11 }
  0x1f   :  { %149 = shalt.err (!%p146_p1)
}
  0x20   :  { %30 = dma.hbm_to_vmem [thread:$0]  %s224_s1, 256, %s28_s15, [#allocation5]  }
  0x21   :  { %150 = dma.done.wait [#allocation3], 256  }
  0x22   :  { %151 = vsyncadd [#allocation3], 4294967040 }
  0x23   :  { %152 = dma.done.wait [#allocation5], 256  }
  0x24   :  { %153 = vsyncadd [#allocation5], 4294967040  ;;  %vm41_vm0 = vcmask 7168   ;;  %v156_v0 = vmov 0.0   ;;  %v44_v1 = vld [vmem:[#allocation2] sm:$0xff]  ;;  %v45_v2 = vld [vmem:[#allocation2 + $0x8] sm:$0xff] }
  0x25   :  { %42 = vst.msk [vmem:[%s225_s2] sm:$0xff] %vm41_vm0, %v156_v0  ;;  %43 = vst.msk [vmem:[%s226_s3] sm:$0xff] %vm41_vm0, %v156_v0  ;;  %v48_v3 = vsub.f32 1.0, %v44_v1  ;;  %v49_v4 = vsub.f32 1.0, %v45_v2  ;;  %98 = vlog2.f32 %v44_v1  ;;  %v46_v6 = vld [vmem:[#allocation4] sm:$0xff]  ;;  %v47_v8 = vld [vmem:[#allocation4 + $0x8] sm:$0xff]  ;;  %v62_v10 = vmul.f32 %v44_v1, %v44_v1 }
  0x26   :  { %100 = vlog2.f32 %v45_v2  ;;  %v60_v9 = vsub.f32 1.0, %v46_v6  ;;  %v61_v11 = vsub.f32 1.0, %v47_v8  ;;  %v63_v12 = vmul.f32 %v45_v2, %v45_v2 }
  0x27   :  { %102 = vlog2.f32 %v48_v3  ;;  %v50_v5 = vmul.f32 %v48_v3, %v48_v3  ;;  %v51_v7 = vmul.f32 %v49_v4, %v49_v4 }
  0x28   :  { %104 = vlog2.f32 %v49_v4  ;;  %v64_v18 = vmul.f32 %v62_v10, %v60_v9  ;;  %v65_v21 = vmul.f32 %v63_v12, %v61_v11 }
  0x29   :  { %v52_v13 = vmul.f32 %v50_v5, %v46_v6  ;;  %v53_v15 = vmul.f32 %v51_v7, %v47_v8 }
  0x2c   :  { %v72_v31 = vld [vmem:[%s225_s2] sm:$0xff] }
  0x2d   :  { %v79_v34 = vld [vmem:[%s226_s3] sm:$0xff] }
  0x2f   :  { %v99_v14 = vpop.eup %98 }
  0x30   :  { %v101_v16 = vpop.eup %100  ;;  %v55_v17 = vmul.f32 0.6931472, %v99_v14 }
  0x31   :  { %v103_v19 = vpop.eup %102  ;;  %v57_v20 = vmul.f32 0.6931472, %v101_v16 }
  0x32   :  { %v105_v22 = vpop.eup %104  ;;  %v58_v23 = vmul.f32 %v55_v17, %v52_v13  ;;  %v67_v24 = vmul.f32 0.6931472, %v103_v19 }
  0x33   :  { %v59_v25 = vmul.f32 %v57_v20, %v53_v15  ;;  %v69_v26 = vmul.f32 0.6931472, %v105_v22 }
  0x34   :  { %v70_v27 = vmul.f32 %v67_v24, %v64_v18 }
  0x35   :  { %v73_v28 = vadd.f32 %v59_v25, %v58_v23  ;;  %v71_v29 = vmul.f32 %v69_v26, %v65_v21 }
  0x37   :  { %74 = vadd.xlane.f32.xlu0 %v73_v28  ;;  %v80_v30 = vadd.f32 %v71_v29, %v70_v27 }
  0x3b   :  { %81 = vadd.xlane.f32.xlu0 %v80_v30 }
  0xc4   :  { %v75_v32 = vpop.xlane.xlu0 %74 }
  0xc5   :  { %v76_v33 = vadd.f32 %v75_v32, %v72_v31 }
  0xc7   :  { %78 = vst.msk [vmem:[%s225_s2] sm:$0xff] %vm41_vm0, %v76_v33 }
  0xc8   :  { %v82_v35 = vpop.xlane.xlu0 %81 }
  0xc9   :  { %v83_v36 = vadd.f32 %v82_v35, %v79_v34 }
  0xcb   :  { %84 = vst.msk [vmem:[%s226_s3] sm:$0xff] %vm41_vm0, %v83_v36 }
  0xcc   :  { %93 = vsyncpa [#allocation3], 1 }
  0xcd   :  { %94 = vsyncpa [#allocation5], 1 }

</bundles_post_ra>
